<compile_context>
chip_gen: v7x
topology: tpu7x:2x2x1
jax: 0.10.0
libtpu: 0.0.40
codegen_flags: <defaults>
</compile_context>

<pallas_src>
import jax
import jax.numpy as jnp
import numpy as np
from jax.experimental import pallas as pl
from jax.experimental.pallas import tpu as pltpu


def cfg_denoiser_kernel(scal_ref,   # SMEM (B+1,): sigma[0..B-1], cond_scale
                        x_ref,      # VMEM (B*C, HW)
                        u_ref,      # VMEM (B, S, D)  uncond
                        c_ref,      # VMEM (B, S, D)  cond
                        w_ref,      # VMEM (B*C, B*C + 2 + D) packed weights
                        o_ref):     # VMEM (B*C, HW)
    BC, HW = x_ref.shape
    B, S, D = u_ref.shape
    C = BC // B

    # ---- SMEM scalars first, before any vector work ----
    cond_scale = scal_ref[B]
    c_in = [jax.lax.rsqrt(scal_ref[b] * scal_ref[b] + 1.0) for b in range(B)]

    # ---- unpack the single packed weight tile (tiny, one vreg-ish) ----
    w = w_ref[...]
    w_big   = w[:, 0:BC]                 # (B*C, B*C) = kron(I_B, W1^T)
    b1_col  = w[:, BC:BC + 1]            # (B*C, 1)
    bc_col  = w[:, BC + 1:BC + 2]        # (B*C, 1)
    wct_big = w[:, BC + 2:BC + 2 + D]    # (B*C, D): row b*C+co = Wc^T[co, :]

    # per-row c_in column: rows [b*C, (b+1)*C) get c_in(sigma[b])
    row = jax.lax.broadcasted_iota(jnp.int32, (BC, 1), 0)
    c_in_col = jnp.full((BC, 1), c_in[0], dtype=jnp.float32)
    for b in range(1, B):
        c_in_col = jnp.where(row >= b * C, c_in[b], c_in_col)

    # ---- x path: unrolled VPU broadcast-FMAs against block-diag kron(I_B, W1^T).
    # Contraction dim is tiny & static -> no MXU push (>96% padded otherwise).
    x = x_ref[...]                       # (B*C, HW): HW lane-dense, 8/8 sublanes
    h = w_big[:, 0:1] * x[0:1, :]
    for r in range(1, BC):               # static unroll (B*C == 8)
        h = h + w_big[:, r:r + 1] * x[r:r + 1, :]
    h = (h + b1_col) * c_in_col          # (B*C, HW)

    # ---- conditioning path fused with the CFG combine ----
    # The cond path is linear in (uncond, cond) and the x path is identical for
    # both duplicated halves, so
    #   u + (c - u)*cs == h + Wc^T @ mean_S(uncond + (cond - uncond)*cs) + bc
    # which collapses the combine to a single (B*C, 1) delta column.
    rows_d = jax.lax.broadcasted_iota(jnp.int32, (BC, D), 0)
    u0 = u_ref[0]
    cn0 = c_ref[0]
    m_rows = jnp.broadcast_to(
        jnp.mean(u0 + (cn0 - u0) * cond_scale, axis=0, keepdims=True), (BC, D))
    for b in range(1, B):                # static unroll (B == 2)
        ub = u_ref[b]
        cb = c_ref[b]
        m_b = jnp.mean(ub + (cb - ub) * cond_scale, axis=0, keepdims=True)   # (1, D)
        m_rows = jnp.where(rows_d >= b * C,
                           jnp.broadcast_to(m_b, (BC, D)), m_rows)

    delta_col = jnp.sum(wct_big * m_rows, axis=1, keepdims=True) + bc_col    # (B*C, 1)

    # One full-sublane, lane-dense store.
    o_ref[...] = h + delta_col


def prepare_cfg_weights(params, batch):
    """One-time weight re-orientation (weights are constant across sampler steps)."""
    C = params["w1"].shape[0]
    w1t = params["w1"].T.astype(jnp.float32)                          # (C, C)
    w_big = jnp.kron(jnp.eye(batch, dtype=jnp.float32), w1t)          # (B*C, B*C)
    b1_col = jnp.tile(params["b1"].reshape(C, 1).astype(jnp.float32), (batch, 1))
    bc_col = jnp.tile(params["bc"].reshape(C, 1).astype(jnp.float32), (batch, 1))
    wct_big = jnp.tile(params["wc"].T.astype(jnp.float32), (batch, 1))  # (B*C, D)
    return jnp.concatenate([w_big, b1_col, bc_col, wct_big], axis=1)   # (B*C, B*C+2+D)


def cfg_denoiser(x_nchw, sigma, uncond, cond, cond_scale, packed_w):
    """x_nchw: [B, C, H, W]; sigma: [B]; uncond/cond: [B, S, D]; cond_scale: scalar.

    packed_w: output of prepare_cfg_weights (precomputed once, not per step).
    """
    B, C, H, W = x_nchw.shape
    HW = H * W
    BC = B * C

    # [B, C, H, W] -> [B*C, HW] is a pure reshape (no transpose, no extra HBM
    # round trip).  HW lands on the lane axis, B*C fills all 8 sublanes.
    x = x_nchw.reshape(BC, HW)

    scal = jnp.concatenate([sigma.astype(jnp.float32),
                            jnp.full((1,), cond_scale, dtype=jnp.float32)])

    out = pl.pallas_call(
        cfg_denoiser_kernel,
        out_shape=jax.ShapeDtypeStruct((BC, HW), jnp.float32),
        in_specs=[
            pl.BlockSpec(memory_space=pltpu.MemorySpace.SMEM),   # sigma + cond_scale
            pl.BlockSpec(memory_space=pltpu.MemorySpace.VMEM),   # x (B*C, HW)
            pl.BlockSpec(memory_space=pltpu.MemorySpace.VMEM),   # uncond (B, S, D)
            pl.BlockSpec(memory_space=pltpu.MemorySpace.VMEM),   # cond (B, S, D)
            pl.BlockSpec(memory_space=pltpu.MemorySpace.VMEM),   # packed weights
        ],
        out_specs=pl.BlockSpec(memory_space=pltpu.MemorySpace.VMEM),
    )(scal, x, uncond, cond, packed_w)

    # [B*C, HW] -> [B, C, H, W]: pure reshape again.
    return out.reshape(B, C, H, W)


def reference(x_nchw, sigma, uncond, cond, cond_scale, params):
    """Pure-JAX reference that literally mimics the PyTorch CFG flow."""
    B, C, H, W = x_nchw.shape

    def inner_model(x_in, sigma_in, cond_in):
        b2 = x_in.shape[0]
        xf = jnp.transpose(x_in, (0, 2, 3, 1)).reshape(b2, H * W, C)
        c_in = 1.0 / jnp.sqrt(sigma_in ** 2 + 1.0)
        h = jnp.einsum("bnc,cd->bnd", xf, params["w1"],
                       precision=jax.lax.Precision.HIGHEST) + params["b1"][0]
        h = h * c_in[:, None, None]
        p = jnp.einsum("bsd,dc->bsc", cond_in, params["wc"],
                       precision=jax.lax.Precision.HIGHEST) + params["bc"][0]
        h = h + jnp.mean(p, axis=1, keepdims=True)
        return jnp.transpose(h.reshape(b2, H, W, C), (0, 3, 1, 2))

    x_in = jnp.concatenate([x_nchw] * 2)
    sigma_in = jnp.concatenate([sigma] * 2)
    cond_in = jnp.concatenate([uncond, cond])
    out = inner_model(x_in, sigma_in, cond_in)
    u, c = out[:B], out[B:]
    return u + (c - u) * cond_scale


if __name__ == "__main__":
    B, C, H, W = 2, 4, 16, 16
    S, D = 8, 32

    key = jax.random.PRNGKey(0)
    k_x, k_u, k_c, k_s, k_w1, k_wc, k_b1, k_bc = jax.random.split(key, 8)

    x = jax.random.normal(k_x, (B, C, H, W), dtype=jnp.float32)
    sigma = jax.random.uniform(k_s, (B,), dtype=jnp.float32, minval=0.5, maxval=10.0)
    uncond = jax.random.normal(k_u, (B, S, D), dtype=jnp.float32)
    cond = jax.random.normal(k_c, (B, S, D), dtype=jnp.float32)
    cond_scale = 7.5

    params = {
        "w1": jax.random.normal(k_w1, (C, C), dtype=jnp.float32) * 0.2,
        "b1": jax.random.normal(k_b1, (1, C), dtype=jnp.float32) * 0.1,
        "wc": jax.random.normal(k_wc, (D, C), dtype=jnp.float32) * 0.1,
        "bc": jax.random.normal(k_bc, (1, C), dtype=jnp.float32) * 0.1,
    }

    # One-time host-side weight packing (hoisted out of the per-step call).
    packed_w = jax.block_until_ready(prepare_cfg_weights(params, B))

    out = cfg_denoiser(x, sigma, uncond, cond, cond_scale, packed_w)
    out = jax.block_until_ready(out)

    ref = reference(x, sigma, uncond, cond, cond_scale, params)
    np.testing.assert_allclose(np.asarray(out), np.asarray(ref), rtol=1e-5, atol=1e-5)

    print("KERNEL_OK")
</pallas_src>

<mosaic_0001>
module attributes {stable_mosaic.version = 11 : i64} {
  func.func @cfg_denoiser_kernel(%arg0: memref<3xf32, #tpu.memory_space<smem>>, %arg1: memref<8x256xf32, #tpu.memory_space<vmem>>, %arg2: memref<2x8x32xf32, #tpu.memory_space<vmem>>, %arg3: memref<2x8x32xf32, #tpu.memory_space<vmem>>, %arg4: memref<8x42xf32, #tpu.memory_space<vmem>>, %arg5: memref<8x256xf32, #tpu.memory_space<vmem>>) attributes {dimension_semantics = [], scalar_prefetch = 0 : i64, scratch_operands = 0 : i64, tpu.core_type = #tpu.core_type<tc>} {
    %c2 = arith.constant 2 : index
    %0 = memref.load %arg0[%c2] : memref<3xf32, #tpu.memory_space<smem>>
    %c0 = arith.constant 0 : index
    %1 = memref.load %arg0[%c0] : memref<3xf32, #tpu.memory_space<smem>>
    %c0_0 = arith.constant 0 : index
    %2 = memref.load %arg0[%c0_0] : memref<3xf32, #tpu.memory_space<smem>>
    %3 = arith.mulf %1, %2 : f32
    %cst = arith.constant 1.000000e+00 : f32
    %4 = arith.addf %3, %cst : f32
    %5 = math.rsqrt %4 : f32
    %c1 = arith.constant 1 : index
    %6 = memref.load %arg0[%c1] : memref<3xf32, #tpu.memory_space<smem>>
    %c1_1 = arith.constant 1 : index
    %7 = memref.load %arg0[%c1_1] : memref<3xf32, #tpu.memory_space<smem>>
    %8 = arith.mulf %6, %7 : f32
    %cst_2 = arith.constant 1.000000e+00 : f32
    %9 = arith.addf %8, %cst_2 : f32
    %10 = math.rsqrt %9 : f32
    %c0_3 = arith.constant 0 : index
    %c0_4 = arith.constant 0 : index
    %11 = vector.load %arg4[%c0_3, %c0_4] : memref<8x42xf32, #tpu.memory_space<vmem>>, vector<8x42xf32>
    %12 = vector.extract_strided_slice %11 {offsets = [0, 0], sizes = [8, 8], strides = [1, 1]} : vector<8x42xf32> to vector<8x8xf32>
    %13 = vector.extract_strided_slice %11 {offsets = [0, 8], sizes = [8, 1], strides = [1, 1]} : vector<8x42xf32> to vector<8x1xf32>
    %14 = vector.extract_strided_slice %11 {offsets = [0, 9], sizes = [8, 1], strides = [1, 1]} : vector<8x42xf32> to vector<8x1xf32>
    %15 = vector.extract_strided_slice %11 {offsets = [0, 10], sizes = [8, 32], strides = [1, 1]} : vector<8x42xf32> to vector<8x32xf32>
    %16 = tpu.iota {dimensions = array<i32: 0>} : vector<8x1xi32>
    %17 = vector.broadcast %5 : f32 to vector<8x1xf32>
    %c4_i32 = arith.constant 4 : i32
    %18 = vector.broadcast %c4_i32 : i32 to vector<8x1xi32>
    %19 = arith.cmpi sge, %16, %18 : vector<8x1xi32>
    %20 = vector.broadcast %10 : f32 to vector<8x1xf32>
    %21 = arith.select %19, %20, %17 : vector<8x1xi1>, vector<8x1xf32>
    %c0_5 = arith.constant 0 : index
    %c0_6 = arith.constant 0 : index
    %22 = vector.load %arg1[%c0_5, %c0_6] : memref<8x256xf32, #tpu.memory_space<vmem>>, vector<8x256xf32>
    %23 = vector.extract_strided_slice %12 {offsets = [0, 0], sizes = [8, 1], strides = [1, 1]} : vector<8x8xf32> to vector<8x1xf32>
    %24 = vector.extract_strided_slice %22 {offsets = [0, 0], sizes = [1, 256], strides = [1, 1]} : vector<8x256xf32> to vector<1x256xf32>
    %25 = vector.broadcast %23 : vector<8x1xf32> to vector<8x256xf32>
    %26 = vector.broadcast %24 : vector<1x256xf32> to vector<8x256xf32>
    %27 = arith.mulf %25, %26 : vector<8x256xf32>
    %28 = vector.extract_strided_slice %12 {offsets = [0, 1], sizes = [8, 1], strides = [1, 1]} : vector<8x8xf32> to vector<8x1xf32>
    %29 = vector.extract_strided_slice %22 {offsets = [1, 0], sizes = [1, 256], strides = [1, 1]} : vector<8x256xf32> to vector<1x256xf32>
    %30 = vector.broadcast %28 : vector<8x1xf32> to vector<8x256xf32>
    %31 = vector.broadcast %29 : vector<1x256xf32> to vector<8x256xf32>
    %32 = arith.mulf %30, %31 : vector<8x256xf32>
    %33 = arith.addf %27, %32 : vector<8x256xf32>
    %34 = vector.extract_strided_slice %12 {offsets = [0, 2], sizes = [8, 1], strides = [1, 1]} : vector<8x8xf32> to vector<8x1xf32>
    %35 = vector.extract_strided_slice %22 {offsets = [2, 0], sizes = [1, 256], strides = [1, 1]} : vector<8x256xf32> to vector<1x256xf32>
    %36 = vector.broadcast %34 : vector<8x1xf32> to vector<8x256xf32>
    %37 = vector.broadcast %35 : vector<1x256xf32> to vector<8x256xf32>
    %38 = arith.mulf %36, %37 : vector<8x256xf32>
    %39 = arith.addf %33, %38 : vector<8x256xf32>
    %40 = vector.extract_strided_slice %12 {offsets = [0, 3], sizes = [8, 1], strides = [1, 1]} : vector<8x8xf32> to vector<8x1xf32>
    %41 = vector.extract_strided_slice %22 {offsets = [3, 0], sizes = [1, 256], strides = [1, 1]} : vector<8x256xf32> to vector<1x256xf32>
    %42 = vector.broadcast %40 : vector<8x1xf32> to vector<8x256xf32>
    %43 = vector.broadcast %41 : vector<1x256xf32> to vector<8x256xf32>
    %44 = arith.mulf %42, %43 : vector<8x256xf32>
    %45 = arith.addf %39, %44 : vector<8x256xf32>
    %46 = vector.extract_strided_slice %12 {offsets = [0, 4], sizes = [8, 1], strides = [1, 1]} : vector<8x8xf32> to vector<8x1xf32>
    %47 = vector.extract_strided_slice %22 {offsets = [4, 0], sizes = [1, 256], strides = [1, 1]} : vector<8x256xf32> to vector<1x256xf32>
    %48 = vector.broadcast %46 : vector<8x1xf32> to vector<8x256xf32>
    %49 = vector.broadcast %47 : vector<1x256xf32> to vector<8x256xf32>
    %50 = arith.mulf %48, %49 : vector<8x256xf32>
    %51 = arith.addf %45, %50 : vector<8x256xf32>
    %52 = vector.extract_strided_slice %12 {offsets = [0, 5], sizes = [8, 1], strides = [1, 1]} : vector<8x8xf32> to vector<8x1xf32>
    %53 = vector.extract_strided_slice %22 {offsets = [5, 0], sizes = [1, 256], strides = [1, 1]} : vector<8x256xf32> to vector<1x256xf32>
    %54 = vector.broadcast %52 : vector<8x1xf32> to vector<8x256xf32>
    %55 = vector.broadcast %53 : vector<1x256xf32> to vector<8x256xf32>
    %56 = arith.mulf %54, %55 : vector<8x256xf32>
    %57 = arith.addf %51, %56 : vector<8x256xf32>
    %58 = vector.extract_strided_slice %12 {offsets = [0, 6], sizes = [8, 1], strides = [1, 1]} : vector<8x8xf32> to vector<8x1xf32>
    %59 = vector.extract_strided_slice %22 {offsets = [6, 0], sizes = [1, 256], strides = [1, 1]} : vector<8x256xf32> to vector<1x256xf32>
    %60 = vector.broadcast %58 : vector<8x1xf32> to vector<8x256xf32>
    %61 = vector.broadcast %59 : vector<1x256xf32> to vector<8x256xf32>
    %62 = arith.mulf %60, %61 : vector<8x256xf32>
    %63 = arith.addf %57, %62 : vector<8x256xf32>
    %64 = vector.extract_strided_slice %12 {offsets = [0, 7], sizes = [8, 1], strides = [1, 1]} : vector<8x8xf32> to vector<8x1xf32>
    %65 = vector.extract_strided_slice %22 {offsets = [7, 0], sizes = [1, 256], strides = [1, 1]} : vector<8x256xf32> to vector<1x256xf32>
    %66 = vector.broadcast %64 : vector<8x1xf32> to vector<8x256xf32>
    %67 = vector.broadcast %65 : vector<1x256xf32> to vector<8x256xf32>
    %68 = arith.mulf %66, %67 : vector<8x256xf32>
    %69 = arith.addf %63, %68 : vector<8x256xf32>
    %70 = vector.broadcast %13 : vector<8x1xf32> to vector<8x256xf32>
    %71 = arith.addf %69, %70 : vector<8x256xf32>
    %72 = vector.broadcast %21 : vector<8x1xf32> to vector<8x256xf32>
    %73 = arith.mulf %71, %72 : vector<8x256xf32>
    %74 = tpu.iota {dimensions = array<i32: 0>} : vector<8x32xi32>
    %c0_7 = arith.constant 0 : index
    %c0_8 = arith.constant 0 : index
    %c0_9 = arith.constant 0 : index
    %75 = vector.load %arg2[%c0_7, %c0_8, %c0_9] : memref<2x8x32xf32, #tpu.memory_space<vmem>>, vector<1x8x32xf32>
    %76 = vector.shape_cast %75 : vector<1x8x32xf32> to vector<8x32xf32>
    %c0_10 = arith.constant 0 : index
    %c0_11 = arith.constant 0 : index
    %c0_12 = arith.constant 0 : index
    %77 = vector.load %arg3[%c0_10, %c0_11, %c0_12] : memref<2x8x32xf32, #tpu.memory_space<vmem>>, vector<1x8x32xf32>
    %78 = vector.shape_cast %77 : vector<1x8x32xf32> to vector<8x32xf32>
    %79 = arith.subf %78, %76 : vector<8x32xf32>
    %80 = vector.broadcast %0 : f32 to vector<8x32xf32>
    %81 = arith.mulf %79, %80 : vector<8x32xf32>
    %82 = arith.addf %76, %81 : vector<8x32xf32>
    %cst_13 = arith.constant dense<0.000000e+00> : vector<32xf32>
    %83 = vector.multi_reduction <add>, %82, %cst_13 [0] : vector<8x32xf32> to vector<32xf32>
    %84 = vector.shape_cast %83 : vector<32xf32> to vector<1x32xf32>
    %cst_14 = arith.constant 8.000000e+00 : f32
    %85 = vector.broadcast %cst_14 : f32 to vector<1x32xf32>
    %86 = arith.divf %84, %85 : vector<1x32xf32>
    %87 = vector.shape_cast %86 : vector<1x32xf32> to vector<1x32xf32>
    %88 = vector.broadcast %87 : vector<1x32xf32> to vector<8x32xf32>
    %c1_15 = arith.constant 1 : index
    %c0_16 = arith.constant 0 : index
    %c0_17 = arith.constant 0 : index
    %89 = vector.load %arg2[%c1_15, %c0_16, %c0_17] : memref<2x8x32xf32, #tpu.memory_space<vmem>>, vector<1x8x32xf32>
    %90 = vector.shape_cast %89 : vector<1x8x32xf32> to vector<8x32xf32>
    %c1_18 = arith.constant 1 : index
    %c0_19 = arith.constant 0 : index
    %c0_20 = arith.constant 0 : index
    %91 = vector.load %arg3[%c1_18, %c0_19, %c0_20] : memref<2x8x32xf32, #tpu.memory_space<vmem>>, vector<1x8x32xf32>
    %92 = vector.shape_cast %91 : vector<1x8x32xf32> to vector<8x32xf32>
    %93 = arith.subf %92, %90 : vector<8x32xf32>
    %94 = vector.broadcast %0 : f32 to vector<8x32xf32>
    %95 = arith.mulf %93, %94 : vector<8x32xf32>
    %96 = arith.addf %90, %95 : vector<8x32xf32>
    %cst_21 = arith.constant dense<0.000000e+00> : vector<32xf32>
    %97 = vector.multi_reduction <add>, %96, %cst_21 [0] : vector<8x32xf32> to vector<32xf32>
    %98 = vector.shape_cast %97 : vector<32xf32> to vector<1x32xf32>
    %cst_22 = arith.constant 8.000000e+00 : f32
    %99 = vector.broadcast %cst_22 : f32 to vector<1x32xf32>
    %100 = arith.divf %98, %99 : vector<1x32xf32>
    %c4_i32_23 = arith.constant 4 : i32
    %101 = vector.broadcast %c4_i32_23 : i32 to vector<8x32xi32>
    %102 = arith.cmpi sge, %74, %101 : vector<8x32xi32>
    %103 = vector.shape_cast %100 : vector<1x32xf32> to vector<1x32xf32>
    %104 = vector.broadcast %103 : vector<1x32xf32> to vector<8x32xf32>
    %105 = arith.select %102, %104, %88 : vector<8x32xi1>, vector<8x32xf32>
    %106 = arith.mulf %15, %105 : vector<8x32xf32>
    %cst_24 = arith.constant dense<0.000000e+00> : vector<8xf32>
    %107 = vector.multi_reduction <add>, %106, %cst_24 [1] : vector<8x32xf32> to vector<8xf32>
    %108 = vector.shape_cast %107 : vector<8xf32> to vector<8x1xf32>
    %109 = arith.addf %108, %14 : vector<8x1xf32>
    %110 = vector.broadcast %109 : vector<8x1xf32> to vector<8x256xf32>
    %111 = arith.addf %73, %110 : vector<8x256xf32>
    %c0_25 = arith.constant 0 : index
    %c0_26 = arith.constant 0 : index
    %112 = vector.load %arg5[%c0_25, %c0_26] : memref<8x256xf32, #tpu.memory_space<vmem>>, vector<8x256xf32>
    tpu.vector_store %arg5[%c0_25, %c0_26], %111 {strides = array<i32>} : memref<8x256xf32, #tpu.memory_space<vmem>>, vector<8x256xf32>,
    return
  }
}

</mosaic_0001>

<bundles_post_ra>
// kernel: tpu_custom_call.1
= control target key start
LH: loop header
LB: loop body
LE: loop exit
PB: predicated region body
PF: predicated region fallthrough
CT: control target
= control target key end

     0   :  { %10 = vsyncpa [#allocation5], 0  ;;  %s588_s0 = inlined_call_operand.hbm [shape: f32[3], index: 0, kind: input, shape index: {}]   ;;  %s589_s1 = inlined_call_operand.hbm [shape: f32[8,256], index: 1, kind: input, shape index: {}]   ;;  %s590_s2 = inlined_call_operand.hbm [shape: f32[2,8,32], index: 2, kind: input, shape index: {}]   ;;  %s591_s3 = inlined_call_operand.hbm [shape: f32[2,8,32], index: 3, kind: input, shape index: {}]   ;;  %s592_s4 = inlined_call_operand.vmem [shape: f32[8,42], index: 4, kind: input, shape index: {}]   ;;  %s593_s5 = inlined_call_operand.hbm [shape: f32[8,256], index: 5, kind: output, shape index: {}]  }
   0x1   :  { %11 = vsyncpa [#allocation3], 0 }
   0x2   :  { %12 = vsyncpa [#allocation8], 0 }
   0x3   :  { %13 = vsyncpa [#allocation4], 0  ;;  %s445_s18 = smov [#allocation7]   ;;  %s339_s22 = scalar_lea.hbm %s590_s2, 256 }
   0x4   :  { %s37_s19 = sshll.u32 %s445_s18, 4  ;;  %p340_p0 = scmp.ne.s32.totalorder %s590_s2, %s339_s22  ;;  %s38_s19 = int_to_ptr.vmem [resolvable:$true] %s37_s19 }
   0x5   :  { %p343_p1 = scmp.lt.u32.totalorder %s339_s22, %s590_s2 }
   0x7   :  { %p345_p2 = pnand %p343_p1, %p340_p0 }
   0x9   :  { %348 = shalt.err (!%p345_p2)
}
   0xa   :  { %s349_s27 = scalar_lea.vmem %s38_s19, 256  ;;  %p354_p4 = scmp.lt.s32.totalorder %s38_s19, %s38_s19 }
   0xb   :  { %p350_p3 = scmp.ne.s32.totalorder %s38_s19, %s349_s27  ;;  %p355_p5 = scmp.lt.s32.totalorder %s349_s27, %s349_s27 }
   0xd   :  { %p356_p6 = por %p355_p5, %p354_p4 }
   0xf   :  { %p357_p7 = pnand %p356_p6, %p350_p3 }
  0x11   :  { %360 = shalt.err (!%p357_p7)
}
  0x12   :  { %s446_s28 = smov 128   ;;  %s447_s29 = smov 8  }
  0x13   :  { %43 = dma.hbm_to_vmem [thread:$0]  %s590_s2, 256, %s38_s19, [#allocation8], %s446_s28, %s446_s28, %s447_s29  }
  0x14   :  { %s361_s9 = scalar_lea.hbm %s588_s0, 16 }
  0x15   :  { %p362_p8 = scmp.ne.s32.totalorder %s588_s0, %s361_s9  ;;  %p365_p9 = scmp.lt.u32.totalorder %s361_s9, %s588_s0 }
  0x17   :  { %p367_p10 = pnand %p365_p9, %p362_p8 }
  0x19   :  { %370 = shalt.err (!%p367_p10)
}
  0x1a   :  { %s448_s14 = smov [#allocation2]   ;;  %s449_s2 = smov [#allocation6]  }
  0x1b   :  { %21 = dma.hbm_to_smem %s588_s0, 16, %s448_s14, [#allocation5]  }
  0x1c   :  { %s28_s17 = sshll.u32 %s449_s2, 4  ;;  %s450_s18 = smov [#allocation9]   ;;  %s29_s17 = int_to_ptr.vmem [resolvable:$true] %s28_s17 }
  0x1d   :  { %s49_s19 = sshll.u32 %s450_s18, 4  ;;  %s371_s22 = scalar_lea.hbm %s589_s1, 256  ;;  %s521_s19 = int_to_ptr.vmem [resolvable:$true] %s49_s19 }
  0x1e   :  { %p372_p11 = scmp.ne.s32.totalorder %s589_s1, %s371_s22  ;;  %p375_p12 = scmp.lt.u32.totalorder %s371_s22, %s589_s1 }
  0x20   :  { %p377_p13 = pnand %p375_p12, %p372_p11 }
  0x22   :  { %380 = shalt.err (!%p377_p13)
}
  0x23   :  { %s381_s0 = scalar_lea.vmem %s29_s17, 256  ;;  %p386_p1 = scmp.lt.s32.totalorder %s29_s17, %s29_s17 }
  0x24   :  { %p382_p0 = scmp.ne.s32.totalorder %s29_s17, %s381_s0  ;;  %p387_p2 = scmp.lt.s32.totalorder %s381_s0, %s381_s0 }
  0x26   :  { %p388_p3 = por %p387_p2, %p386_p1 }
  0x28   :  { %p389_p4 = pnand %p388_p3, %p382_p0 }
  0x2a   :  { %392 = shalt.err (!%p389_p4)
}
  0x2b   :  { %31 = dma.hbm_to_vmem [thread:$0]  %s589_s1, 256, %s29_s17, [#allocation3]  }
  0x2c   :  { %s393_s8 = scalar_lea.hbm %s591_s3, 256 }
  0x2d   :  { %p394_p5 = scmp.ne.s32.totalorder %s591_s3, %s393_s8  ;;  %p397_p6 = scmp.lt.u32.totalorder %s393_s8, %s591_s3 }
  0x2f   :  { %p399_p7 = pnand %p397_p6, %p394_p5 }
  0x31   :  { %402 = shalt.err (!%p399_p7)
}
  0x32   :  { %s403_s13 = scalar_lea.vmem %s521_s19, 256  ;;  %p408_p9 = scmp.lt.s32.totalorder %s521_s19, %s521_s19 }
  0x33   :  { %p404_p8 = scmp.ne.s32.totalorder %s521_s19, %s403_s13  ;;  %p409_p10 = scmp.lt.s32.totalorder %s403_s13, %s403_s13 }
  0x35   :  { %p410_p11 = por %p409_p10, %p408_p9 }
  0x37   :  { %p411_p12 = pnand %p410_p11, %p404_p8 }
  0x39   :  { %414 = shalt.err (!%p411_p12)
}
  0x3a   :  { %55 = dma.hbm_to_vmem [thread:$0]  %s591_s3, 256, %s521_s19, [#allocation8], %s446_s28, %s446_s28, %s447_s29  }
  0x3b   :  { %437 = dma.done.wait [#allocation5], 16  }
  0x3c   :  { %438 = vsyncadd [#allocation5], 4294967280 }
  0x3d   :  { %439 = dma.done.wait [#allocation3], 256  }
  0x3e   :  { %440 = vsyncadd [#allocation3], 4294967040 }
  0x3f   :  { %441 = dma.done.wait [#allocation8], 512  }
  0x40   :  { %442 = vsyncadd [#allocation8], 4294966784 }
  0x41   :  { %70 = sfence }
  0x42   :  { %s299_s15 = sld [smem:[#allocation2 + $0x2]]  ;;  %v228_v0 = vld [vmem:[#allocation7] sm:$0xff]  ;;  %v229_v1 = vld [vmem:[#allocation9] sm:$0xff]  ;;  %v245_v2 = vld [vmem:[#allocation7 + $0x8] sm:$0xff]  ;;  %vm234_vm0 = vcmask 261120   ;;  %v85_v17 = vlaneseq  ;;  %s451_s3 = smov 10  }
  0x43   :  { %v247_v3 = vld [vmem:[#allocation9 + $0x8] sm:$0xff]  ;;  %v230_v4 = vsub.f32 %v229_v1, %v228_v0  ;;  %v452_v30 = vmov 0   ;;  %v453_v31 = vmov 1   ;;  %v84_v32 = vld [vmem:[%s592_s4] sm:$0xff]  ;;  %s454_s16 = smov 118   ;;  %v455_v35 = vmov 2  }
  0x44   :  { %v248_v5 = vsub.f32 %v247_v3, %v245_v2  ;;  %v557_v22 = vshrl.u32 %v85_v17, 7  ;;  %324 = vset.pattern.permute.xlu1 %v452_v30  ;;  %325 = vset.pattern.permute.xlu0 %v453_v31  ;;  %v456_v36 = vmov 4   ;;  %v457_v37 = vmov 7   ;;  %s72_s4 = sld [smem:[#allocation2]]  ;;  %s300_s2 = sld [smem:[#allocation2 + $0x1]]  ;;  %v91_v52 = vld [vmem:[#allocation6] sm:$0xff] }
  0x45   :  { %v458_v40 = vmov 9   ;;  %v459_v41 = vmov 3   ;;  %v460_v42 = vmov 5   ;;  %v461_v45 = vmov 6   ;;  %v92_v53 = vld [vmem:[#allocation6 + $0x8] sm:$0xff]  ;;  %s463_s23 = smov [#allocation10]  }
  0x46   :  { %vm88_vm1 = vcmp.ge.s32.totalorder %v557_v22, 4  ;;  %v462_v46 = vmov 8   ;;  %v114_v51 = vsub.s32 1, %v557_v22  ;;  %v100_v54 = vsub.s32 0, %v557_v22  ;;  %s288_s24 = sshll.u32 %s463_s23, 4  ;;  %s289_s24 = int_to_ptr.vmem [resolvable:$true] %s288_s24 }
  0x47   :  { %v130_v60 = vsub.s32 2, %v557_v22  ;;  %s415_s25 = scalar_lea.vmem %s289_s24, 256  ;;  %p420_p0 = scmp.lt.s32.totalorder %s289_s24, %s289_s24 }
  0x48   :  { %v231_v6 = vstv %s299_s15  ;;  %v115_v55 = vrot.slane %v91_v52, %v114_v51  ;;  %v119_v56 = vrot.slane %v92_v53, %v114_v51  ;;  %v101_v58 = vrot.slane %v91_v52, %v100_v54  ;;  %p416_p13 = scmp.ne.s32.totalorder %s289_s24, %s415_s25  ;;  %p421_p1 = scmp.lt.s32.totalorder %s415_s25, %s415_s25 }
  0x49   :  { %v232_v7 = vmul.f32 %v231_v6, %v230_v4  ;;  %v249_v8 = vmul.f32 %v248_v5, %v231_v6  ;;  %v105_v59 = vrot.slane %v92_v53, %v100_v54  ;;  %v131_v3 = vrot.slane %v91_v52, %v130_v60 }
  0x4a   :  { %s73_s17 = smul.f32 %s72_s4, %s72_s4  ;;  %v135_v4 = vrot.slane %v92_v53, %v130_v60  ;;  %p422_p2 = por %p421_p1, %p420_p0 }
  0x4b   :  { %v233_v9 = vadd.f32 %v232_v7, %v228_v0  ;;  %v250_v10 = vadd.f32 %v249_v8, %v245_v2  ;;  %s79_s18 = smul.f32 %s300_s2, %s300_s2  ;;  %v146_v0 = vsub.s32 3, %v557_v22  ;;  %v162_v8 = vsub.s32 4, %v557_v22 }
  0x4c   :  { %s74_s19 = sadd.f32 1.0, %s73_s17  ;;  %p423_p3 = pnand %p422_p2, %p416_p13 }
  0x4d   :  { %v235_v11 = vsel %vm234_vm0, %v233_v9, 0.0  ;;  %v251_v12 = vsel %vm234_vm0, %v250_v10, 0.0  ;;  %s80_s20 = sadd.f32 1.0, %s79_s18  ;;  %v147_v6 = vrot.slane %v91_v52, %v146_v0  ;;  %v151_v7 = vrot.slane %v92_v53, %v146_v0 }
  0x4e   :  { %v236_v13 = vrot.slane %v235_v11, 4  ;;  %v252_v14 = vrot.slane %v251_v12, 4  ;;  %v75_v43 = vstv %s74_s19 }
  0x4f   :  { %335 = vrsqrt.f32 %v75_v43  ;;  %v81_v44 = vstv %s80_s20 }
  0x50   :  { %v237_v15 = vadd.f32 %v236_v13, %v235_v11  ;;  %v253_v16 = vadd.f32 %v252_v14, %v251_v12  ;;  %337 = vrsqrt.f32 %v81_v44  ;;  %v178_v14 = vsub.s32 5, %v557_v22 }
  0x52   :  { %v238_v18 = vrot.slane %v237_v15, 2  ;;  %v254_v19 = vrot.slane %v253_v16, 2 }
  0x54   :  { %v239_v20 = vadd.f32 %v238_v18, %v237_v15  ;;  %v255_v21 = vadd.f32 %v254_v19, %v253_v16  ;;  %v163_v15 = vrot.slane %v91_v52, %v162_v8  ;;  %v167_v16 = vrot.slane %v92_v53, %v162_v8 }
  0x56   :  { %v240_v23 = vrot.slane %v239_v20, 1  ;;  %v256_v24 = vrot.slane %v255_v21, 1 }
  0x58   :  { %v241_v25 = vadd.f32 %v240_v23, %v239_v20  ;;  %v257_v26 = vadd.f32 %v256_v24, %v255_v21  ;;  %v179_v23 = vrot.slane %v91_v52, %v178_v14  ;;  %v183_v24 = vrot.slane %v92_v53, %v178_v14 }
  0x59   :  { %v336_v47 = vpop.eup %335 }
  0x5a   :  { %v243_v27 = vmul.f32 0.125, %v241_v25  ;;  %v258_v28 = vmul.f32 0.125, %v257_v26  ;;  %v338_v48 = vpop.eup %337  ;;  %301 = vpush %v336_v47  ;;  %v194_v26 = vsub.s32 6, %v557_v22 }
  0x5b   :  { %303 = vpush %v338_v48 }
  0x5c   :  { %v259_v29 = vsel %vm88_vm1, %v258_v28, %v243_v27  ;;  %v195_v31 = vrot.slane %v91_v52, %v194_v26 }
  0x5d   :  { %261 = vrot.lane.b32.xlu0 %v259_v29, %s451_s3 }
  0x8b   :  { %s302_s21 = spop %301 }
  0x8c   :  { %s304_s22 = spop %303 }
  0xcf   :  { %v262_v33 = vpop.permute.xlu0 %261 }
  0xd0   :  { %v264_v34 = vmul.f32 %v262_v33, %v84_v32  ;;  %v210_v33 = vsub.s32 7, %v557_v22 }
  0xd2   :  { %266 = vrot.lane.b32.xlu0 %v264_v34, %s454_s16 }
  0xd6   :  { %109 = vperm.xlu0 %325, %v84_v32  }
  0xda   :  { %326 = vset.pattern.permute.xlu0 %v455_v35 }
  0xdb   :  { %125 = vperm.xlu0 %326, %v84_v32  }
  0xdf   :  { %328 = vset.pattern.permute.xlu0 %v456_v36 }
  0xe0   :  { %157 = vperm.xlu0 %328, %v84_v32  }
  0xe4   :  { %331 = vset.pattern.permute.xlu0 %v457_v37 }
  0xe5   :  { %205 = vperm.xlu0 %331, %v84_v32  }
  0xe9   :  { %334 = vset.pattern.permute.xlu0 %v458_v40 }
 0x144   :  { %v267_v38 = vpop.permute.xlu0 %266 }
 0x145   :  { %v269_v39 = vsel %vm234_vm0, %v267_v38, 0.0 }
 0x146   :  { %270 = vadd.xlane.f32.xlu1 %v269_v39  ;;  %v211_v39 = vrot.slane %v91_v52, %v210_v33 }
 0x155   :  { %v110_v57 = vpop.permute.xlu0 %109 }
 0x156   :  { %v120_v62 = vmul.f32 %v115_v55, %v110_v57  ;;  %v121_v63 = vmul.f32 %v119_v56, %v110_v57  ;;  %v87_v55 = vstv %s302_s21  ;;  %v89_v56 = vstv %s304_s22 }
 0x157   :  { %95 = vperm.xlu1 %324, %v84_v32   ;;  %v90_v52 = vsel %vm88_vm1, %v89_v56, %v87_v55 }
 0x15a   :  { %v126_v5 = vpop.permute.xlu0 %125 }
 0x15b   :  { %327 = vset.pattern.permute.xlu1 %v459_v41  ;;  %v136_v11 = vmul.f32 %v131_v3, %v126_v5  ;;  %v137_v12 = vmul.f32 %v135_v4, %v126_v5 }
 0x15c   :  { %141 = vperm.xlu1 %327, %v84_v32  }
 0x15f   :  { %v158_v21 = vpop.permute.xlu0 %157 }
 0x160   :  { %329 = vset.pattern.permute.xlu1 %v460_v42  ;;  %v168_v29 = vmul.f32 %v163_v15, %v158_v21  ;;  %v169_v30 = vmul.f32 %v167_v16, %v158_v21 }
 0x161   :  { %173 = vperm.xlu1 %329, %v84_v32  }
 0x165   :  { %330 = vset.pattern.permute.xlu1 %v461_v45  ;;  %v206_v45 = vpop.permute.xlu0 %205 }
 0x166   :  { %189 = vperm.xlu1 %330, %v84_v32   ;;  %v216_v48 = vmul.f32 %v211_v39, %v206_v45 }
 0x16a   :  { %332 = vset.pattern.permute.xlu1 %v462_v46 }
 0x16b   :  { %221 = vperm.xlu1 %332, %v84_v32  }
 0x16f   :  { %333 = vset.pattern.permute.xlu1 %v458_v40  ;;  %v215_v40 = vrot.slane %v92_v53, %v210_v33 }
 0x1d3   :  { %v271_v49 = vpop.xlane.xlu1 %270 }
 0x1d4   :  { %v272_v50 = vadd.f32 %v271_v49, %v84_v32  ;;  %v199_v32 = vrot.slane %v92_v53, %v194_v26  ;;  %v217_v49 = vmul.f32 %v215_v40, %v206_v45 }
 0x1d6   :  { %275 = vperm.xlu1 %333, %v272_v50  }
 0x1d7   :  { %v96_v61 = vpop.permute.xlu1 %95 }
 0x1d8   :  { %v106_v1 = vmul.f32 %v101_v58, %v96_v61  ;;  %v107_v2 = vmul.f32 %v105_v59, %v96_v61 }
 0x1da   :  { %v122_v9 = vadd.f32 %v120_v62, %v106_v1  ;;  %v123_v10 = vadd.f32 %v121_v63, %v107_v2 }
 0x1db   :  { %v142_v13 = vpop.permute.xlu1 %141 }
 0x1dc   :  { %v152_v17 = vmul.f32 %v147_v6, %v142_v13  ;;  %v153_v18 = vmul.f32 %v151_v7, %v142_v13  ;;  %v138_v19 = vadd.f32 %v136_v11, %v122_v9  ;;  %v139_v20 = vadd.f32 %v137_v12, %v123_v10 }
 0x1de   :  { %v154_v27 = vadd.f32 %v152_v17, %v138_v19  ;;  %v155_v28 = vadd.f32 %v153_v18, %v139_v20 }
 0x1e0   :  { %v174_v25 = vpop.permute.xlu1 %173  ;;  %v170_v36 = vadd.f32 %v168_v29, %v154_v27  ;;  %v171_v37 = vadd.f32 %v169_v30, %v155_v28 }
 0x1e1   :  { %v184_v34 = vmul.f32 %v179_v23, %v174_v25  ;;  %v185_v35 = vmul.f32 %v183_v24, %v174_v25 }
 0x1e3   :  { %v186_v41 = vadd.f32 %v184_v34, %v170_v36  ;;  %v187_v42 = vadd.f32 %v185_v35, %v171_v37 }
 0x1e5   :  { %v190_v38 = vpop.permute.xlu1 %189 }
 0x1e6   :  { %v200_v43 = vmul.f32 %v195_v31, %v190_v38  ;;  %v201_v44 = vmul.f32 %v199_v32, %v190_v38 }
 0x1e8   :  { %v202_v46 = vadd.f32 %v200_v43, %v186_v41  ;;  %v203_v47 = vadd.f32 %v201_v44, %v187_v42 }
 0x1ea   :  { %v218_v50 = vadd.f32 %v216_v48, %v202_v46  ;;  %v219_v51 = vadd.f32 %v217_v49, %v203_v47  ;;  %v222_v54 = vpop.permute.xlu1 %221 }
 0x1ec   :  { %v224_v57 = vadd.f32 %v222_v54, %v218_v50  ;;  %v225_v58 = vadd.f32 %v222_v54, %v219_v51 }
 0x1ee   :  { %v226_v53 = vmul.f32 %v224_v57, %v90_v52  ;;  %v227_v59 = vmul.f32 %v225_v58, %v90_v52 }
 0x255   :  { %v276_v60 = vpop.permute.xlu1 %275 }
 0x256   :  { %v278_v61 = vadd.f32 %v276_v60, %v226_v53  ;;  %v279_v62 = vadd.f32 %v276_v60, %v227_v59 }
 0x258   :  { %280 = vst [vmem:[#allocation10] sm:$0xff] %v278_v61  ;;  %281 = vst [vmem:[#allocation10 + $0x8] sm:$0xff] %v279_v62 }
 0x259   :  { %426 = shalt.err (!%p423_p3)
}
 0x25a   :  { %s427_s27 = scalar_lea.hbm %s593_s5, 256 }
 0x25b   :  { %p428_p4 = scmp.ne.s32.totalorder %s593_s5, %s427_s27  ;;  %p431_p5 = scmp.lt.u32.totalorder %s427_s27, %s593_s5 }
 0x25d   :  { %p433_p6 = pnand %p431_p5, %p428_p4 }
 0x25f   :  { %436 = shalt.err (!%p433_p6)
}
 0x260   :  { %291 = dma.vmem_to_hbm [thread:$0]  %s289_s24, 256, %s593_s5, [#allocation4]  }
 0x261   :  { %443 = dma.done.wait [#allocation4], 256  }
 0x262   :  { %444 = vsyncadd [#allocation4], 4294967040 }
 0x263   :  { %295 = vsyncpa [#allocation3], 1 }
 0x264   :  { %296 = vsyncpa [#allocation8], 1 }
 0x265   :  { %297 = vsyncpa [#allocation4], 1 }
 0x266   :  { %298 = vsyncpa [#allocation5], 1 }

</bundles_post_ra>
